<compile_context>
chip_gen: v7x
topology: tpu7x:2x2x1
jax: 0.10.0
libtpu: 0.0.40
codegen_flags: <defaults>
</compile_context>

<pallas_src>
import math

import jax
import jax.numpy as jnp
from jax.experimental import pallas as pl
from jax.experimental.pallas import tpu as pltpu


def attention_kernel(x_ref, w_ref, b_ref, o_ref):
    # x_ref: (TB, S, F)   w_ref: (1, F)   b_ref: (1, S)   o_ref: (TB, F)
    x = x_ref[...]                                     # keep native dtype
    w = w_ref[...].astype(x.dtype).reshape(1, 1, -1)   # (1, 1, F)
    b = b_ref[...].astype(jnp.float32)                 # (1, S)

    # Projection on the VPU: broadcast-multiply + lane reduction, f32 accum.
    eij = jnp.sum(x * w, axis=-1, dtype=jnp.float32)   # (TB, S)
    eij = jnp.tanh(eij + b)

    a = jnp.exp(eij)                                   # (TB, S)
    row_sum = jnp.sum(a, axis=-1, keepdims=True)       # (TB, 1)
    # Exact reciprocal keeps us bit-close to the PyTorch reference; flip to
    # approx=True (EUP vrcp) if ~1e-4 relative tolerance is acceptable.
    a = a * pl.reciprocal(row_sum, approx=False) + 1e-10

    # Weighted sum over the step axis (sublane reduction), f32 accumulator.
    out = jnp.sum(x * a[:, :, None].astype(x.dtype), axis=1, dtype=jnp.float32)
    o_ref[...] = out.astype(o_ref.dtype)


def _pick_batch_tile(B, S, F, itemsize, target_block_bytes):
    """Largest batch tile whose x block fits the per-buffer VMEM budget."""
    rows = max(1, target_block_bytes // max(1, S * F * itemsize))
    if rows >= B:
        return B, B                       # single block covers the whole batch
    tb = max(8, (rows // 8) * 8)          # sublane-aligned tile when B is split
    b_pad = ((B + tb - 1) // tb) * tb
    return tb, b_pad


def attention_forward(x, weight, bias=None):
    B, S, F = x.shape
    w2d = weight.reshape(1, F).astype(jnp.float32)     # lane-dense weight row
    if bias is None:
        b2d = jnp.zeros((1, S), dtype=jnp.float32)
    else:
        b2d = bias.reshape(1, S).astype(jnp.float32)

    # Generation-aware VMEM budget: keep each x block <= ~8 MiB so default
    # double-buffering stays well under v7x's 64 MiB (trivially under 128 MiB
    # on v5e/v6e).
    try:
        vmem_bytes = pltpu.get_tpu_info().vmem_capacity_bytes
    except Exception:  # query unavailable (interpret mode / older jax)
        vmem_bytes = 64 * 1024 * 1024
    target_block_bytes = min(vmem_bytes // 8, 8 * 1024 * 1024)

    tb, b_pad = _pick_batch_tile(B, S, F, x.dtype.itemsize, target_block_bytes)
    if b_pad != B:
        x = jnp.pad(x, ((0, b_pad - B), (0, 0), (0, 0)))

    out = pl.pallas_call(
        attention_kernel,
        out_shape=jax.ShapeDtypeStruct((b_pad, F), x.dtype),
        grid=(b_pad // tb,),
        in_specs=[
            pl.BlockSpec((tb, S, F), lambda i: (i, 0, 0)),  # x: tiled over batch
            pl.BlockSpec((1, F), lambda i: (0, 0)),         # weight: resident
            pl.BlockSpec((1, S), lambda i: (0, 0)),         # bias: resident
        ],
        out_specs=pl.BlockSpec((tb, F), lambda i: (i, 0)),
        compiler_params=pltpu.CompilerParams(
            dimension_semantics=("parallel",),
            vmem_limit_bytes=32 * 1024 * 1024,
        ),
    )(x, w2d, b2d)
    return out[:B] if b_pad != B else out


def reference_forward(x, weight, bias):
    B, S, F = x.shape
    eij = (x.reshape(-1, F) @ weight.reshape(F, 1)).reshape(-1, S)
    eij = eij + bias.reshape(1, S)
    eij = jnp.tanh(eij)
    a = jnp.exp(eij)
    a = a / jnp.sum(a, axis=1, keepdims=True) + 1e-10
    return jnp.sum(x * a[:, :, None], axis=1)


if __name__ == "__main__":
    batch, step_dim, feature_dim = 2, 8, 32

    key = jax.random.PRNGKey(0)
    kx, kw, kb = jax.random.split(key, 3)

    x = jax.random.normal(kx, (batch, step_dim, feature_dim), dtype=jnp.float32)

    # xavier_uniform_ for a (feature_dim, 1) weight
    bound = math.sqrt(6.0 / (feature_dim + 1))
    weight = jax.random.uniform(kw, (feature_dim, 1), dtype=jnp.float32,
                                minval=-bound, maxval=bound)
    # bias is a learnable parameter (zeros at init); use non-trivial values so
    # the bias-add path is actually exercised.
    bias = 0.1 * jax.random.normal(kb, (step_dim,), dtype=jnp.float32)

    out = jax.block_until_ready(attention_forward(x, weight, bias))
    ref = reference_forward(x, weight, bias)

    assert out.shape == (batch, feature_dim)
    assert jnp.allclose(out, ref, atol=1e-5, rtol=1e-5), \
        float(jnp.max(jnp.abs(out - ref)))

    print("KERNEL_OK")
</pallas_src>

<mosaic_0001>
module attributes {stable_mosaic.version = 11 : i64} {
  func.func @attention_kernel(%arg0: i32, %arg1: memref<2x8x32xf32, #tpu.memory_space<vmem>>, %arg2: memref<1x32xf32, #tpu.memory_space<vmem>>, %arg3: memref<1x8xf32, #tpu.memory_space<vmem>>, %arg4: memref<2x32xf32, #tpu.memory_space<vmem>>) attributes {dimension_semantics = [#tpu.dimension_semantics<parallel>], iteration_bounds = array<i64: 1>, scalar_prefetch = 0 : i64, scratch_operands = 0 : i64, tpu.core_type = #tpu.core_type<tc>, window_params = [{transform_indices = @transform_0, window_bounds = array<i64: 2, 8, 32>}, {pipeline_mode = #tpu.pipeline_mode<synchronous>, transform_indices = @transform_1, window_bounds = array<i64: 1, 32>}, {pipeline_mode = #tpu.pipeline_mode<synchronous>, transform_indices = @transform_2, window_bounds = array<i64: 1, 8>}, {transform_indices = @transform_3, window_bounds = array<i64: 2, 32>}]} {
    %c0 = arith.constant 0 : index
    %c0_0 = arith.constant 0 : index
    %c0_1 = arith.constant 0 : index
    %0 = vector.load %arg1[%c0, %c0_0, %c0_1] : memref<2x8x32xf32, #tpu.memory_space<vmem>>, vector<2x8x32xf32>
    %c0_2 = arith.constant 0 : index
    %c0_3 = arith.constant 0 : index
    %1 = vector.load %arg2[%c0_2, %c0_3] : memref<1x32xf32, #tpu.memory_space<vmem>>, vector<1x32xf32>
    %2 = vector.shape_cast %1 : vector<1x32xf32> to vector<1x1x32xf32>
    %c0_4 = arith.constant 0 : index
    %c0_5 = arith.constant 0 : index
    %3 = vector.load %arg3[%c0_4, %c0_5] : memref<1x8xf32, #tpu.memory_space<vmem>>, vector<1x8xf32>
    %4 = vector.broadcast %2 : vector<1x1x32xf32> to vector<2x8x32xf32>
    %5 = arith.mulf %0, %4 : vector<2x8x32xf32>
    %cst = arith.constant dense<0.000000e+00> : vector<2x8xf32>
    %6 = vector.multi_reduction <add>, %5, %cst [2] : vector<2x8x32xf32> to vector<2x8xf32>
    %7 = vector.broadcast %3 : vector<1x8xf32> to vector<2x8xf32>
    %8 = arith.addf %6, %7 : vector<2x8xf32>
    %9 = math.tanh %8 : vector<2x8xf32>
    %10 = math.exp %9 : vector<2x8xf32>
    %cst_6 = arith.constant dense<0.000000e+00> : vector<2xf32>
    %11 = vector.multi_reduction <add>, %10, %cst_6 [1] : vector<2x8xf32> to vector<2xf32>
    %12 = vector.shape_cast %11 : vector<2xf32> to vector<2x1xf32>
    %13 = tpu.reciprocal %12 : vector<2x1xf32> -> vector<2x1xf32>
    %14 = vector.broadcast %13 : vector<2x1xf32> to vector<2x8xf32>
    %15 = arith.mulf %10, %14 : vector<2x8xf32>
    %cst_7 = arith.constant 1.000000e-10 : f32
    %16 = vector.broadcast %cst_7 : f32 to vector<2x8xf32>
    %17 = arith.addf %15, %16 : vector<2x8xf32>
    %18 = vector.shape_cast %17 : vector<2x8xf32> to vector<2x8x1xf32>
    %19 = vector.broadcast %18 : vector<2x8x1xf32> to vector<2x8x32xf32>
    %20 = arith.mulf %0, %19 : vector<2x8x32xf32>
    %cst_8 = arith.constant dense<0.000000e+00> : vector<2x32xf32>
    %21 = vector.multi_reduction <add>, %20, %cst_8 [1] : vector<2x8x32xf32> to vector<2x32xf32>
    %c0_9 = arith.constant 0 : index
    %c0_10 = arith.constant 0 : index
    %22 = vector.load %arg4[%c0_9, %c0_10] : memref<2x32xf32, #tpu.memory_space<vmem>>, vector<2x32xf32>
    tpu.vector_store %arg4[%c0_9, %c0_10], %21 {strides = array<i32>} : memref<2x32xf32, #tpu.memory_space<vmem>>, vector<2x32xf32>,
    return
  }
  func.func @transform_0(%arg0: i32) -> (i32, i32, i32) {
    %c0_i32 = arith.constant 0 : i32
    %c0_i32_0 = arith.constant 0 : i32
    %c0_i32_1 = arith.constant 0 : i32
    return %arg0, %c0_i32, %c0_i32_0 : i32, i32, i32
  }
  func.func @transform_1(%arg0: i32) -> (i32, i32) {
    %c0_i32 = arith.constant 0 : i32
    %c0_i32_0 = arith.constant 0 : i32
    %c0_i32_1 = arith.constant 0 : i32
    return %c0_i32, %c0_i32_0 : i32, i32
  }
  func.func @transform_2(%arg0: i32) -> (i32, i32) {
    %c0_i32 = arith.constant 0 : i32
    %c0_i32_0 = arith.constant 0 : i32
    %c0_i32_1 = arith.constant 0 : i32
    return %c0_i32, %c0_i32_0 : i32, i32
  }
  func.func @transform_3(%arg0: i32) -> (i32, i32) {
    %c0_i32 = arith.constant 0 : i32
    %c0_i32_0 = arith.constant 0 : i32
    return %arg0, %c0_i32 : i32, i32
  }
}

</mosaic_0001>

<bundles_post_ra>
// kernel: tpu_custom_call.1
= control target key start
LH: loop header
LB: loop body
LE: loop exit
PB: predicated region body
PF: predicated region fallthrough
CT: control target
= control target key end

     0   :  { %8 = vsyncpa [#allocation3], 0  ;;  %s281_s0 = inlined_call_operand.hbm [shape: f32[2,8,32], index: 0, kind: input, shape index: {}]   ;;  %s282_s1 = inlined_call_operand.vmem [shape: f32[1,32], index: 1, kind: input, shape index: {}]   ;;  %s283_s2 = inlined_call_operand.vmem [shape: f32[1,8], index: 2, kind: input, shape index: {}]   ;;  %s284_s3 = inlined_call_operand.hbm [shape: f32[2,32], index: 3, kind: output, shape index: {}]  }
   0x1   :  { %9 = vsyncpa [#allocation4], 0  ;;  %s220_s12 = smov [#allocation2]   ;;  %s172_s16 = scalar_lea.hbm %s281_s0, 256 }
   0x2   :  { %s15_s13 = sshll.u32 %s220_s12, 4  ;;  %p173_p0 = scmp.ne.s32.totalorder %s281_s0, %s172_s16  ;;  %s16_s13 = int_to_ptr.vmem [resolvable:$true] %s15_s13 }
   0x3   :  { %p176_p1 = scmp.lt.u32.totalorder %s172_s16, %s281_s0 }
   0x5   :  { %p178_p2 = pnand %p176_p1, %p173_p0 }
   0x7   :  { %181 = shalt.err (!%p178_p2)
}
   0x8   :  { %s182_s21 = scalar_lea.vmem %s16_s13, 256  ;;  %p187_p4 = scmp.lt.s32.totalorder %s16_s13, %s16_s13 }
   0x9   :  { %p183_p3 = scmp.ne.s32.totalorder %s16_s13, %s182_s21  ;;  %p188_p5 = scmp.lt.s32.totalorder %s182_s21, %s182_s21 }
   0xb   :  { %p189_p6 = por %p188_p5, %p187_p4 }
   0xd   :  { %p190_p7 = pnand %p189_p6, %p183_p3 }
   0xf   :  { %193 = shalt.err (!%p190_p7)
}
  0x10   :  { %s221_s22 = smov 128   ;;  %s222_s23 = smov 8  }
  0x11   :  { %21 = dma.hbm_to_vmem [thread:$0]  %s281_s0, 256, %s16_s13, [#allocation3], %s221_s22, %s221_s22, %s222_s23  }
  0x12   :  { %216 = dma.done.wait [#allocation3], 256  }
  0x13   :  { %217 = vsyncadd [#allocation3], 4294967040  ;;  %v29_v0 = vld [vmem:[#allocation2] sm:$0xff]  ;;  %vm41_vm0 = vcmask 261120   ;;  %v30_v2 = vld [vmem:[#allocation2 + $0x8] sm:$0xff]  ;;  %v223_v8 = vmov 0   ;;  %v73_v20 = vlaneseq }
  0x14   :  { %v153_v1 = vld [vmem:[%s282_s1] ss:$0 sm:$0xff]  ;;  %160 = vset.pattern.permute.xlu1 %v223_v8  ;;  %161 = vset.pattern.permute.xlu0 %v223_v8  ;;  %vm83_vm1 = vcmask 1041409   ;;  %vm86_vm2 = vcmask 58368   ;;  %s224_s0 = smov [#allocation5]   ;;  %vm136_vm3 = vcmask 254976  }
  0x15   :  { %v39_v3 = vmul.f32 %v153_v1, %v29_v0  ;;  %v40_v4 = vmul.f32 %v153_v1, %v30_v2  ;;  %v154_v5 = vld [vmem:[%s283_s2] ss:$0 sm:$0xff]  ;;  %v74_v21 = vand.u32 127, %v73_v20  ;;  %v76_v22 = vshrl.u32 %v73_v20, 7  ;;  %s144_s1 = sshll.u32 %s224_s0, 4  ;;  %s145_s1 = int_to_ptr.vmem [resolvable:$true] %s144_s1 }
  0x16   :  { %54 = vbcast.lane.b32.xlu1 %v154_v5, 256  ;;  %s194_s2 = scalar_lea.vmem %s145_s1, 32  ;;  %p199_p9 = scmp.lt.s32.totalorder %s145_s1, %s145_s1 }
  0x17   :  { %v42_v6 = vsel %vm41_vm0, %v39_v3, 0.0  ;;  %v45_v7 = vsel %vm41_vm0, %v40_v4, 0.0  ;;  %v77_v23 = vsub.s32 %v74_v21, %v76_v22  ;;  %v98_v31 = vsub.s32 1, %v76_v22  ;;  %p195_p8 = scmp.ne.s32.totalorder %s145_s1, %s194_s2  ;;  %p200_p10 = scmp.lt.s32.totalorder %s194_s2, %s194_s2 }
  0x18   :  { %43 = vadd.xlane.f32.xlu0 %v42_v6  ;;  %v94_v32 = vsub.s32 0, %v76_v22 }
  0x19   :  { %p201_p11 = por %p200_p10, %p199_p9 }
  0x1b   :  { %p202_p12 = pnand %p201_p11, %p195_p8 }
  0x1c   :  { %46 = vadd.xlane.f32.xlu0 %v45_v7 }
  0x88   :  { %v55_v9 = vpop.permute.xlu1 %54 }
  0xa5   :  { %v44_v10 = vpop.xlane.xlu0 %43 }
  0xa6   :  { %v57_v11 = vadd.f32 %v55_v9, %v44_v10 }
  0xa8   :  { %162 = vtanh.f32 %v57_v11 }
  0xa9   :  { %v47_v12 = vpop.xlane.xlu0 %46 }
  0xaa   :  { %v58_v13 = vadd.f32 %v55_v9, %v47_v12 }
  0xac   :  { %164 = vtanh.f32 %v58_v13 }
  0xb2   :  { %v163_v14 = vpop.eup %162 }
  0xb3   :  { %v61_v15 = vmul.f32 1.442695, %v163_v14 }
  0xb5   :  { %166 = vpow2.f32 %v61_v15 }
  0xb6   :  { %v165_v16 = vpop.eup %164 }
  0xb7   :  { %v63_v17 = vmul.f32 1.442695, %v165_v16 }
  0xb9   :  { %168 = vpow2.f32 %v63_v17 }
  0xbf   :  { %v167_v18 = vpop.eup %166 }
  0xc0   :  { %68 = vperm.xlu1 %160, %v167_v18  }
  0xc3   :  { %v169_v19 = vpop.eup %168 }
  0xc4   :  { %71 = vperm.xlu0 %161, %v169_v19  }
 0x13f   :  { %v69_v24 = vpop.permute.xlu1 %68 }
 0x140   :  { %v78_v26 = vrot.slane %v69_v24, %v77_v23 }
 0x143   :  { %v72_v25 = vpop.permute.xlu0 %71 }
 0x144   :  { %v82_v27 = vrot.slane %v72_v25, %v77_v23 }
 0x146   :  { %v84_v28 = vsel %vm83_vm1, %v82_v27, %v78_v26 }
 0x147   :  { %v87_v29 = vsel %vm86_vm2, %v84_v28, 0.0 }
 0x148   :  { %88 = vadd.xlane.f32.xlu1 %v87_v29 }
 0x1d5   :  { %v89_v30 = vpop.xlane.xlu1 %88 }
 0x1d6   :  { %170 = vrcp.f32 %v89_v30 }
 0x1e0   :  { %v171_v33 = vpop.eup %170 }
 0x1e1   :  { %v99_v34 = vrot.slane %v171_v33, %v98_v31  ;;  %v95_v35 = vrot.slane %v171_v33, %v94_v32 }
 0x1e3   :  { %v103_v36 = vmul.f32 %v169_v19, %v99_v34  ;;  %v102_v37 = vmul.f32 %v167_v18, %v95_v35 }
 0x1e5   :  { %v105_v38 = vadd.f32 1e-10, %v103_v36  ;;  %v104_v39 = vadd.f32 1e-10, %v102_v37 }
 0x1e7   :  { %113 = vperm.xlu0 %161, %v105_v38   ;;  %108 = vperm.xlu1 %160, %v104_v39  }
 0x266   :  { %v114_v40 = vpop.permute.xlu0 %113  ;;  %v109_v41 = vpop.permute.xlu1 %108 }
 0x267   :  { %v117_v42 = vmul.f32 %v114_v40, %v30_v2  ;;  %v116_v43 = vmul.f32 %v109_v41, %v29_v0 }
 0x269   :  { %v125_v44 = vsel %vm41_vm0, %v117_v42, 0.0  ;;  %v118_v45 = vsel %vm41_vm0, %v116_v43, 0.0 }
 0x26a   :  { %v126_v46 = vrot.slane %v125_v44, 4  ;;  %v119_v47 = vrot.slane %v118_v45, 4 }
 0x26c   :  { %v127_v48 = vadd.f32 %v126_v46, %v125_v44  ;;  %v120_v49 = vadd.f32 %v119_v47, %v118_v45 }
 0x26e   :  { %v128_v50 = vrot.slane %v127_v48, 2  ;;  %v121_v51 = vrot.slane %v120_v49, 2 }
 0x270   :  { %v129_v52 = vadd.f32 %v128_v50, %v127_v48  ;;  %v122_v53 = vadd.f32 %v121_v51, %v120_v49 }
 0x272   :  { %v130_v54 = vrot.slane %v129_v52, 1  ;;  %v123_v55 = vrot.slane %v122_v53, 1 }
 0x274   :  { %v131_v56 = vadd.f32 %v130_v54, %v129_v52  ;;  %v124_v57 = vadd.f32 %v123_v55, %v122_v53 }
 0x276   :  { %v134_v58 = vsel %vm83_vm1, %v131_v56, %v124_v57 }
 0x277   :  { %137 = vst.msk [vmem:[#allocation5] sm:$0x3] %vm136_vm3, %v134_v58 }
 0x278   :  { %205 = shalt.err (!%p202_p12)
}
 0x279   :  { %s206_s5 = scalar_lea.hbm %s284_s3, 32 }
 0x27a   :  { %p207_p13 = scmp.ne.s32.totalorder %s284_s3, %s206_s5  ;;  %p210_p0 = scmp.lt.u32.totalorder %s206_s5, %s284_s3 }
 0x27c   :  { %p212_p1 = pnand %p210_p0, %p207_p13 }
 0x27e   :  { %215 = shalt.err (!%p212_p1)
}
 0x27f   :  { %147 = dma.vmem_to_hbm [thread:$0]  %s145_s1, 32, %s284_s3, [#allocation4]  }
 0x280   :  { %218 = dma.done.wait [#allocation4], 32  }
 0x281   :  { %219 = vsyncadd [#allocation4], 4294967264 }
 0x282   :  { %151 = vsyncpa [#allocation3], 1 }
 0x283   :  { %152 = vsyncpa [#allocation4], 1 }

</bundles_post_ra>
